<compile_context>
chip_gen: v7x
topology: tpu7x:2x2x1
jax: 0.10.0
libtpu: 0.0.40
codegen_flags: <defaults>
</compile_context>

<pallas_src>
import math

import jax
import jax.numpy as jnp
from jax import lax
from jax.experimental import pallas as pl
from jax.experimental.pallas import tpu as pltpu

LN_EPS = 1e-5


def residual_layer_kernel(x_ref, w1_ref, w2_ref, p_ref, o_ref):
    w1 = w1_ref[...]                       # (in_dim, out_dim), f32 or bf16
    w2 = w2_ref[...]                       # (out_dim, out_dim)
    p = p_ref[...].astype(jnp.float32)     # (4, out_dim): b1, b2, gamma, beta
    b1 = p[0:1, :]
    b2 = p[1:2, :]
    gamma = p[2:3, :]
    beta = p[3:4, :]

    # lin1 + relu   (dropout p=0.0 -> identity); f32 accumulation on the MXU.
    x = x_ref[...].astype(w1.dtype)
    h = jnp.dot(x, w1, preferred_element_type=jnp.float32) + b1
    h = jnp.maximum(h, 0.0)

    # lin2 + relu   (dropout p=0.0 -> identity). Residual uses the f32 h.
    y = jnp.dot(h.astype(w2.dtype), w2, preferred_element_type=jnp.float32) + b2
    y = jnp.maximum(y, 0.0)

    # residual add + LayerNorm (biased variance, eps=1e-5), affine -- all f32.
    # One-pass stats: E[z] and E[z^2] are independent reductions, so the second
    # XLU reduce does not wait on the first; clamp var >= 0 for safety.
    z = y + h
    mean = jnp.mean(z, axis=-1, keepdims=True)
    mean_sq = jnp.mean(z * z, axis=-1, keepdims=True)
    var = jnp.maximum(mean_sq - mean * mean, 0.0)
    zn = (z - mean) * lax.rsqrt(var + LN_EPS)
    o_ref[...] = (zn * gamma + beta).astype(o_ref.dtype)


def _round_up(a, b):
    return ((a + b - 1) // b) * b


def _vmem_capacity_bytes():
    """Per-TensorCore VMEM capacity (generation-aware), conservative fallback."""
    try:
        cap = pltpu.get_tpu_info().vmem_capacity_bytes
        if cap:
            return int(cap)
    except Exception:
        pass
    return 64 << 20   # v7x per-TC VMEM (smallest current generation)


def _per_row_tile_bytes(in_dim, out_dim, x_itemsize, mxu_itemsize):
    """VMEM bytes per row of the row tile: double-buffered streamed x tile and
    out tile, plus Mosaic internal scratch for the f32 intermediates (h/y/z)
    and the casted MXU operand copies of x/h."""
    in_pad = _round_up(max(in_dim, 1), 128)
    out_pad = _round_up(max(out_dim, 1), 128)
    return (2 * in_pad * x_itemsize            # x tile (2 pipeline buffers)
            + 2 * out_pad * x_itemsize         # out tile (2 pipeline buffers)
            + 3 * out_pad * 4                  # h / y / z f32 intermediates
            + (in_pad + out_pad) * mxu_itemsize)  # casted matmul operands


def _pick_row_tile(rows, in_dim, out_dim, x_itemsize, mxu_itemsize,
                   resident_bytes, vmem_budget):
    """Pick an M tile: largest multiple of 256 (whole v6e/v7x MXU passes) that
    fits the VMEM budget after resident weights, with 128 / 8-granular
    fallbacks; clamped for tiny inputs and so the row grid has >= 2 steps
    (keeps v7x's second TensorCore busy under "parallel" semantics)."""
    per_row = _per_row_tile_bytes(in_dim, out_dim, x_itemsize, mxu_itemsize)
    tile_budget = max(vmem_budget - resident_bytes - (4 << 20), 8 * per_row)
    rt = min(512, tile_budget // per_row)
    if rt >= 256:
        rt = (rt // 256) * 256
    elif rt >= 128:
        rt = 128
    else:
        rt = max(8, (rt // 8) * 8)
    rt = min(rt, max(8, _round_up((rows + 1) // 2, 8)))
    return max(int(rt), 8)


def prepare_residual_layer_params(w1, b1, w2, b2, gamma, beta, *, mxu_dtype=None):
    """One-time parameter prep (hoisted out of the per-call hot path).

    Transposes the PyTorch nn.Linear-convention weights to [in, out], casts the
    MXU operands (bf16 pays off on v5e, v6e and v7x alike -- the MXU is
    bf16-native on all of them; bias/ReLU/LayerNorm math stays f32 inside the
    kernel), and stacks the four 1-D params into one (4, out_dim) slab so the
    kernel needs a single constant-index operand for them."""
    compute_dtype = (jnp.dtype(mxu_dtype) if mxu_dtype is not None
                     else jnp.dtype(jnp.float32))
    w1t = jnp.asarray(w1).T.astype(compute_dtype)
    w2t = jnp.asarray(w2).T.astype(compute_dtype)
    params = jnp.stack(
        [jnp.asarray(b1), jnp.asarray(b2), jnp.asarray(gamma), jnp.asarray(beta)],
        axis=0,
    ).astype(jnp.float32)
    return w1t, w2t, params


def residual_layer_old_apply(x, prepared, *, row_tile=None):
    """Apply the fused layer. `prepared` = prepare_residual_layer_params(...)."""
    w1t, w2t, params = prepared
    in_dim, out_dim = w1t.shape
    assert x.shape[-1] == in_dim
    lead = x.shape[:-1]
    rows = math.prod(lead) if lead else 1
    x2 = x.reshape(rows, in_dim)

    x_itemsize = jnp.dtype(x.dtype).itemsize
    mxu_itemsize = jnp.dtype(w1t.dtype).itemsize
    # Resident (single-buffered) weights + stacked params.
    w_bytes = (w1t.size + w2t.size) * mxu_itemsize
    params_bytes = params.size * 4
    resident = w_bytes + params_bytes

    vmem_budget = int(0.875 * _vmem_capacity_bytes())

    if row_tile is None:
        row_tile = _pick_row_tile(rows, in_dim, out_dim, x_itemsize,
                                  mxu_itemsize, resident, vmem_budget)
    rows_padded = row_tile * ((rows + row_tile - 1) // row_tile)
    if rows_padded != rows:
        x2 = jnp.pad(x2, ((0, rows_padded - rows), (0, 0)))

    est_vmem = resident + row_tile * _per_row_tile_bytes(
        in_dim, out_dim, x_itemsize, mxu_itemsize)
    vmem_limit = None
    if est_vmem > (32 << 20):
        # Raise above the 32 MiB scoped default, stay under ~87.5% of the
        # generation's physical per-TC VMEM.
        vmem_limit = min(est_vmem + (8 << 20), vmem_budget)

    grid = (rows_padded // row_tile,)

    def make_call(single_buffer_weights):
        def wspec(shape):
            if single_buffer_weights:
                # Grid-invariant operands: constant index_map -> double
                # buffering buys no overlap, keep a single resident copy.
                return pl.BlockSpec(shape, lambda i: (0, 0),
                                    pipeline_mode=pl.Buffered(1))
            return pl.BlockSpec(shape, lambda i: (0, 0))

        return pl.pallas_call(
            residual_layer_kernel,
            out_shape=jax.ShapeDtypeStruct((rows_padded, out_dim), x.dtype),
            grid_spec=pltpu.PrefetchScalarGridSpec(
                num_scalar_prefetch=0,
                grid=grid,
                in_specs=[
                    # x is the only streamed input; if its DMA shows exposed in
                    # profiles, bump to pipeline_mode=pl.Buffered(3). Do NOT
                    # pre-cast x to bf16 in the wrapper (extra HBM traffic).
                    pl.BlockSpec((row_tile, in_dim), lambda i: (i, 0)),
                    wspec((in_dim, out_dim)),      # W1^T (full, resident)
                    wspec((out_dim, out_dim)),     # W2^T (full, resident)
                    wspec((4, out_dim)),           # b1, b2, gamma, beta
                ],
                out_specs=pl.BlockSpec((row_tile, out_dim), lambda i: (i, 0)),
            ),
            compiler_params=pltpu.CompilerParams(
                dimension_semantics=("parallel",),  # row axis shards across TCs (v7x)
                vmem_limit_bytes=vmem_limit,
            ),
        )

    try:
        out2 = make_call(True)(x2, w1t, w2t, params)
    except Exception:
        # pl.Buffered(1) unsupported by this jax/libtpu build -> fall back to
        # default (double) buffering; correctness identical, only more VMEM.
        out2 = make_call(False)(x2, w1t, w2t, params)

    if rows_padded != rows:
        out2 = out2[:rows]
    return out2.reshape(*lead, out_dim)


def residual_layer_old(x, w1, b1, w2, b2, gamma, beta, *, row_tile=None,
                       mxu_dtype=None):
    """Convenience one-shot wrapper (PyTorch nn.Linear conventions:
    w1: (out_dim, in_dim), w2: (out_dim, out_dim), 1-D biases/affine).
    For hot loops, call prepare_residual_layer_params() once and reuse
    residual_layer_old_apply() so the transpose/cast/stack isn't re-emitted."""
    prepared = prepare_residual_layer_params(w1, b1, w2, b2, gamma, beta,
                                             mxu_dtype=mxu_dtype)
    return residual_layer_old_apply(x, prepared, row_tile=row_tile)


def _reference(x, w1, b1, w2, b2, gamma, beta):
    h = jax.nn.relu(jnp.einsum("...i,oi->...o", x, w1) + b1)
    y = jax.nn.relu(jnp.einsum("...i,oi->...o", h, w2) + b2)
    z = y + h
    mean = jnp.mean(z, axis=-1, keepdims=True)
    var = jnp.mean((z - mean) ** 2, axis=-1, keepdims=True)
    return (z - mean) / jnp.sqrt(var + LN_EPS) * gamma + beta


if __name__ == "__main__":
    batch, seq = 2, 8
    in_dim, out_dim = 32, 32

    key = jax.random.PRNGKey(0)
    kx, k1, k2, k3, k4, kx2 = jax.random.split(key, 6)

    x = jax.random.normal(kx, (batch, seq, in_dim), dtype=jnp.float32)

    # Deterministic parameter init (PyTorch nn.Linear-style uniform bounds).
    bound1 = 1.0 / (in_dim ** 0.5)
    bound2 = 1.0 / (out_dim ** 0.5)
    w1 = jax.random.uniform(k1, (out_dim, in_dim), minval=-bound1, maxval=bound1)
    b1 = jax.random.uniform(k2, (out_dim,), minval=-bound1, maxval=bound1)
    w2 = jax.random.uniform(k3, (out_dim, out_dim), minval=-bound2, maxval=bound2)
    b2 = jax.random.uniform(k4, (out_dim,), minval=-bound2, maxval=bound2)
    gamma = jnp.ones((out_dim,), dtype=jnp.float32)   # LayerNorm weight init
    beta = jnp.zeros((out_dim,), dtype=jnp.float32)   # LayerNorm bias init

    # Parameter prep hoisted out of the per-call hot path; reused below.
    prep_f32 = prepare_residual_layer_params(w1, b1, w2, b2, gamma, beta)

    # f32 path (exact match to the reference).
    out = jax.block_until_ready(residual_layer_old_apply(x, prep_f32))
    ref = _reference(x, w1, b1, w2, b2, gamma, beta)
    assert out.shape == (batch, seq, out_dim)
    assert jnp.allclose(out, ref, atol=1e-5, rtol=1e-5), "mismatch vs reference (f32)"

    # Non-divisible row count exercises the pad-and-slice path (and a 2-step grid).
    x_odd = jax.random.normal(kx2, (3, 50, in_dim), dtype=jnp.float32)
    out_odd = jax.block_until_ready(residual_layer_old_apply(x_odd, prep_f32))
    ref_odd = _reference(x_odd, w1, b1, w2, b2, gamma, beta)
    assert out_odd.shape == (3, 50, out_dim)
    assert jnp.allclose(out_odd, ref_odd, atol=1e-5, rtol=1e-5), "mismatch (padded rows)"

    # bf16 MXU-operand path (pays off on v5e/v6e/v7x): LayerNorm output is ~unit
    # scale, so a loose absolute tolerance is appropriate.
    prep_bf16 = prepare_residual_layer_params(w1, b1, w2, b2, gamma, beta,
                                              mxu_dtype=jnp.bfloat16)
    out_bf16 = jax.block_until_ready(residual_layer_old_apply(x, prep_bf16))
    assert jnp.allclose(out_bf16, ref, atol=5e-2, rtol=0.0), "mismatch (bf16 MXU)"

    print("KERNEL_OK")
</pallas_src>

<mosaic_0001>
module attributes {stable_mosaic.version = 11 : i64} {
  func.func @residual_layer_kernel(%arg0: i32, %arg1: memref<8x32xf32, #tpu.memory_space<vmem>>, %arg2: memref<32x32xf32, #tpu.memory_space<vmem>>, %arg3: memref<32x32xf32, #tpu.memory_space<vmem>>, %arg4: memref<4x32xf32, #tpu.memory_space<vmem>>, %arg5: memref<8x32xf32, #tpu.memory_space<vmem>>) attributes {dimension_semantics = [#tpu.dimension_semantics<parallel>], iteration_bounds = array<i64: 2>, scalar_prefetch = 0 : i64, scratch_operands = 0 : i64, tpu.core_type = #tpu.core_type<tc>, window_params = [{transform_indices = @transform_0, window_bounds = array<i64: 8, 32>}, {pipeline_mode = #tpu.pipeline_mode<synchronous>, transform_indices = @transform_1, window_bounds = array<i64: 32, 32>}, {pipeline_mode = #tpu.pipeline_mode<synchronous>, transform_indices = @transform_2, window_bounds = array<i64: 32, 32>}, {pipeline_mode = #tpu.pipeline_mode<synchronous>, transform_indices = @transform_3, window_bounds = array<i64: 4, 32>}, {transform_indices = @transform_4, window_bounds = array<i64: 8, 32>}]} {
    %c0 = arith.constant 0 : index
    %c0_0 = arith.constant 0 : index
    %0 = vector.load %arg2[%c0, %c0_0] : memref<32x32xf32, #tpu.memory_space<vmem>>, vector<32x32xf32>
    %c0_1 = arith.constant 0 : index
    %c0_2 = arith.constant 0 : index
    %1 = vector.load %arg3[%c0_1, %c0_2] : memref<32x32xf32, #tpu.memory_space<vmem>>, vector<32x32xf32>
    %c0_3 = arith.constant 0 : index
    %c0_4 = arith.constant 0 : index
    %2 = vector.load %arg4[%c0_3, %c0_4] : memref<4x32xf32, #tpu.memory_space<vmem>>, vector<4x32xf32>
    %3 = vector.extract_strided_slice %2 {offsets = [0, 0], sizes = [1, 32], strides = [1, 1]} : vector<4x32xf32> to vector<1x32xf32>
    %4 = vector.extract_strided_slice %2 {offsets = [1, 0], sizes = [1, 32], strides = [1, 1]} : vector<4x32xf32> to vector<1x32xf32>
    %5 = vector.extract_strided_slice %2 {offsets = [2, 0], sizes = [1, 32], strides = [1, 1]} : vector<4x32xf32> to vector<1x32xf32>
    %6 = vector.extract_strided_slice %2 {offsets = [3, 0], sizes = [1, 32], strides = [1, 1]} : vector<4x32xf32> to vector<1x32xf32>
    %c0_5 = arith.constant 0 : index
    %c0_6 = arith.constant 0 : index
    %7 = vector.load %arg1[%c0_5, %c0_6] : memref<8x32xf32, #tpu.memory_space<vmem>>, vector<8x32xf32>
    %cst = arith.constant dense<0.000000e+00> : vector<8x32xf32>
    %8 = tpu.matmul %7, %0, %cst {dimension_numbers = #tpu.dot_dimension_numbers<[1], [0], [0], [1], [0, 0, 1, 1], [], []>} : vector<8x32xf32>, vector<32x32xf32>, vector<8x32xf32> -> vector<8x32xf32>
    %9 = vector.broadcast %3 : vector<1x32xf32> to vector<8x32xf32>
    %10 = arith.addf %8, %9 : vector<8x32xf32>
    %cst_7 = arith.constant 0.000000e+00 : f32
    %11 = vector.broadcast %cst_7 : f32 to vector<8x32xf32>
    %12 = arith.maximumf %10, %11 : vector<8x32xf32>
    %cst_8 = arith.constant dense<0.000000e+00> : vector<8x32xf32>
    %13 = tpu.matmul %12, %1, %cst_8 {dimension_numbers = #tpu.dot_dimension_numbers<[1], [0], [0], [1], [0, 0, 1, 1], [], []>} : vector<8x32xf32>, vector<32x32xf32>, vector<8x32xf32> -> vector<8x32xf32>
    %14 = vector.broadcast %4 : vector<1x32xf32> to vector<8x32xf32>
    %15 = arith.addf %13, %14 : vector<8x32xf32>
    %cst_9 = arith.constant 0.000000e+00 : f32
    %16 = vector.broadcast %cst_9 : f32 to vector<8x32xf32>
    %17 = arith.maximumf %15, %16 : vector<8x32xf32>
    %18 = arith.addf %17, %12 : vector<8x32xf32>
    %cst_10 = arith.constant dense<0.000000e+00> : vector<8xf32>
    %19 = vector.multi_reduction <add>, %18, %cst_10 [1] : vector<8x32xf32> to vector<8xf32>
    %20 = vector.shape_cast %19 : vector<8xf32> to vector<8x1xf32>
    %cst_11 = arith.constant 3.200000e+01 : f32
    %21 = vector.broadcast %cst_11 : f32 to vector<8x1xf32>
    %22 = arith.divf %20, %21 : vector<8x1xf32>
    %23 = arith.mulf %18, %18 : vector<8x32xf32>
    %cst_12 = arith.constant dense<0.000000e+00> : vector<8xf32>
    %24 = vector.multi_reduction <add>, %23, %cst_12 [1] : vector<8x32xf32> to vector<8xf32>
    %25 = vector.shape_cast %24 : vector<8xf32> to vector<8x1xf32>
    %cst_13 = arith.constant 3.200000e+01 : f32
    %26 = vector.broadcast %cst_13 : f32 to vector<8x1xf32>
    %27 = arith.divf %25, %26 : vector<8x1xf32>
    %28 = arith.mulf %22, %22 : vector<8x1xf32>
    %29 = arith.subf %27, %28 : vector<8x1xf32>
    %cst_14 = arith.constant 0.000000e+00 : f32
    %30 = vector.broadcast %cst_14 : f32 to vector<8x1xf32>
    %31 = arith.maximumf %29, %30 : vector<8x1xf32>
    %32 = vector.broadcast %22 : vector<8x1xf32> to vector<8x32xf32>
    %33 = arith.subf %18, %32 : vector<8x32xf32>
    %cst_15 = arith.constant 9.99999974E-6 : f32
    %34 = vector.broadcast %cst_15 : f32 to vector<8x1xf32>
    %35 = arith.addf %31, %34 : vector<8x1xf32>
    %36 = math.rsqrt %35 : vector<8x1xf32>
    %37 = vector.broadcast %36 : vector<8x1xf32> to vector<8x32xf32>
    %38 = arith.mulf %33, %37 : vector<8x32xf32>
    %39 = vector.broadcast %5 : vector<1x32xf32> to vector<8x32xf32>
    %40 = arith.mulf %38, %39 : vector<8x32xf32>
    %41 = vector.broadcast %6 : vector<1x32xf32> to vector<8x32xf32>
    %42 = arith.addf %40, %41 : vector<8x32xf32>
    %c0_16 = arith.constant 0 : index
    %c0_17 = arith.constant 0 : index
    %43 = vector.load %arg5[%c0_16, %c0_17] : memref<8x32xf32, #tpu.memory_space<vmem>>, vector<8x32xf32>
    tpu.vector_store %arg5[%c0_16, %c0_17], %42 {strides = array<i32>} : memref<8x32xf32, #tpu.memory_space<vmem>>, vector<8x32xf32>,
    return
  }
  func.func @transform_0(%arg0: i32) -> (i32, i32) {
    %c0_i32 = arith.constant 0 : i32
    %c0_i32_0 = arith.constant 0 : i32
    return %arg0, %c0_i32 : i32, i32
  }
  func.func @transform_1(%arg0: i32) -> (i32, i32) {
    %c0_i32 = arith.constant 0 : i32
    %c0_i32_0 = arith.constant 0 : i32
    %c0_i32_1 = arith.constant 0 : i32
    return %c0_i32, %c0_i32_0 : i32, i32
  }
  func.func @transform_2(%arg0: i32) -> (i32, i32) {
    %c0_i32 = arith.constant 0 : i32
    %c0_i32_0 = arith.constant 0 : i32
    %c0_i32_1 = arith.constant 0 : i32
    return %c0_i32, %c0_i32_0 : i32, i32
  }
  func.func @transform_3(%arg0: i32) -> (i32, i32) {
    %c0_i32 = arith.constant 0 : i32
    %c0_i32_0 = arith.constant 0 : i32
    %c0_i32_1 = arith.constant 0 : i32
    return %c0_i32, %c0_i32_0 : i32, i32
  }
  func.func @transform_4(%arg0: i32) -> (i32, i32) {
    %c0_i32 = arith.constant 0 : i32
    %c0_i32_0 = arith.constant 0 : i32
    return %arg0, %c0_i32 : i32, i32
  }
}

module attributes {stable_mosaic.version = 11 : i64} {
  func.func @residual_layer_kernel(%arg0: i32, %arg1: memref<8x32xf32, #tpu.memory_space<vmem>>, %arg2: memref<32x32xf32, #tpu.memory_space<vmem>>, %arg3: memref<32x32xf32, #tpu.memory_space<vmem>>, %arg4: memref<4x32xf32, #tpu.memory_space<vmem>>, %arg5: memref<8x32xf32, #tpu.memory_space<vmem>>) attributes {dimension_semantics = [#tpu.dimension_semantics<parallel>], iteration_bounds = array<i64: 2>, scalar_prefetch = 0 : i64, scratch_operands = 0 : i64, tpu.core_type = #tpu.core_type<tc>, window_params = [{transform_indices = @transform_0, window_bounds = array<i64: 8, 32>}, {pipeline_mode = #tpu.pipeline_mode<synchronous>, transform_indices = @transform_1, window_bounds = array<i64: 32, 32>}, {pipeline_mode = #tpu.pipeline_mode<synchronous>, transform_indices = @transform_2, window_bounds = array<i64: 32, 32>}, {pipeline_mode = #tpu.pipeline_mode<synchronous>, transform_indices = @transform_3, window_bounds = array<i64: 4, 32>}, {transform_indices = @transform_4, window_bounds = array<i64: 8, 32>}]} {
    %c0 = arith.constant 0 : index
    %c0_0 = arith.constant 0 : index
    %0 = vector.load %arg2[%c0, %c0_0] : memref<32x32xf32, #tpu.memory_space<vmem>>, vector<32x32xf32>
    %c0_1 = arith.constant 0 : index
    %c0_2 = arith.constant 0 : index
    %1 = vector.load %arg3[%c0_1, %c0_2] : memref<32x32xf32, #tpu.memory_space<vmem>>, vector<32x32xf32>
    %c0_3 = arith.constant 0 : index
    %c0_4 = arith.constant 0 : index
    %2 = vector.load %arg4[%c0_3, %c0_4] : memref<4x32xf32, #tpu.memory_space<vmem>>, vector<4x32xf32>
    %3 = vector.extract_strided_slice %2 {offsets = [0, 0], sizes = [1, 32], strides = [1, 1]} : vector<4x32xf32> to vector<1x32xf32>
    %4 = vector.extract_strided_slice %2 {offsets = [1, 0], sizes = [1, 32], strides = [1, 1]} : vector<4x32xf32> to vector<1x32xf32>
    %5 = vector.extract_strided_slice %2 {offsets = [2, 0], sizes = [1, 32], strides = [1, 1]} : vector<4x32xf32> to vector<1x32xf32>
    %6 = vector.extract_strided_slice %2 {offsets = [3, 0], sizes = [1, 32], strides = [1, 1]} : vector<4x32xf32> to vector<1x32xf32>
    %c0_5 = arith.constant 0 : index
    %c0_6 = arith.constant 0 : index
    %7 = vector.load %arg1[%c0_5, %c0_6] : memref<8x32xf32, #tpu.memory_space<vmem>>, vector<8x32xf32>
    %cst = arith.constant dense<0.000000e+00> : vector<8x32xf32>
    %8 = tpu.matmul %7, %0, %cst {dimension_numbers = #tpu.dot_dimension_numbers<[1], [0], [0], [1], [0, 0, 1, 1], [], []>} : vector<8x32xf32>, vector<32x32xf32>, vector<8x32xf32> -> vector<8x32xf32>
    %9 = vector.broadcast %3 : vector<1x32xf32> to vector<8x32xf32>
    %10 = arith.addf %8, %9 : vector<8x32xf32>
    %cst_7 = arith.constant 0.000000e+00 : f32
    %11 = vector.broadcast %cst_7 : f32 to vector<8x32xf32>
    %12 = arith.maximumf %10, %11 : vector<8x32xf32>
    %cst_8 = arith.constant dense<0.000000e+00> : vector<8x32xf32>
    %13 = tpu.matmul %12, %1, %cst_8 {dimension_numbers = #tpu.dot_dimension_numbers<[1], [0], [0], [1], [0, 0, 1, 1], [], []>} : vector<8x32xf32>, vector<32x32xf32>, vector<8x32xf32> -> vector<8x32xf32>
    %14 = vector.broadcast %4 : vector<1x32xf32> to vector<8x32xf32>
    %15 = arith.addf %13, %14 : vector<8x32xf32>
    %cst_9 = arith.constant 0.000000e+00 : f32
    %16 = vector.broadcast %cst_9 : f32 to vector<8x32xf32>
    %17 = arith.maximumf %15, %16 : vector<8x32xf32>
    %18 = arith.addf %17, %12 : vector<8x32xf32>
    %cst_10 = arith.constant dense<0.000000e+00> : vector<8xf32>
    %19 = vector.multi_reduction <add>, %18, %cst_10 [1] : vector<8x32xf32> to vector<8xf32>
    %20 = vector.shape_cast %19 : vector<8xf32> to vector<8x1xf32>
    %cst_11 = arith.constant 3.200000e+01 : f32
    %21 = vector.broadcast %cst_11 : f32 to vector<8x1xf32>
    %22 = arith.divf %20, %21 : vector<8x1xf32>
    %23 = arith.mulf %18, %18 : vector<8x32xf32>
    %cst_12 = arith.constant dense<0.000000e+00> : vector<8xf32>
    %24 = vector.multi_reduction <add>, %23, %cst_12 [1] : vector<8x32xf32> to vector<8xf32>
    %25 = vector.shape_cast %24 : vector<8xf32> to vector<8x1xf32>
    %cst_13 = arith.constant 3.200000e+01 : f32
    %26 = vector.broadcast %cst_13 : f32 to vector<8x1xf32>
    %27 = arith.divf %25, %26 : vector<8x1xf32>
    %28 = arith.mulf %22, %22 : vector<8x1xf32>
    %29 = arith.subf %27, %28 : vector<8x1xf32>
    %cst_14 = arith.constant 0.000000e+00 : f32
    %30 = vector.broadcast %cst_14 : f32 to vector<8x1xf32>
    %31 = arith.maximumf %29, %30 : vector<8x1xf32>
    %32 = vector.broadcast %22 : vector<8x1xf32> to vector<8x32xf32>
    %33 = arith.subf %18, %32 : vector<8x32xf32>
    %cst_15 = arith.constant 9.99999974E-6 : f32
    %34 = vector.broadcast %cst_15 : f32 to vector<8x1xf32>
    %35 = arith.addf %31, %34 : vector<8x1xf32>
    %36 = math.rsqrt %35 : vector<8x1xf32>
    %37 = vector.broadcast %36 : vector<8x1xf32> to vector<8x32xf32>
    %38 = arith.mulf %33, %37 : vector<8x32xf32>
    %39 = vector.broadcast %5 : vector<1x32xf32> to vector<8x32xf32>
    %40 = arith.mulf %38, %39 : vector<8x32xf32>
    %41 = vector.broadcast %6 : vector<1x32xf32> to vector<8x32xf32>
    %42 = arith.addf %40, %41 : vector<8x32xf32>
    %c0_16 = arith.constant 0 : index
    %c0_17 = arith.constant 0 : index
    %43 = vector.load %arg5[%c0_16, %c0_17] : memref<8x32xf32, #tpu.memory_space<vmem>>, vector<8x32xf32>
    tpu.vector_store %arg5[%c0_16, %c0_17], %42 {strides = array<i32>} : memref<8x32xf32, #tpu.memory_space<vmem>>, vector<8x32xf32>,
    return
  }
  func.func @transform_0(%arg0: i32) -> (i32, i32) {
    %c0_i32 = arith.constant 0 : i32
    %c0_i32_0 = arith.constant 0 : i32
    return %arg0, %c0_i32 : i32, i32
  }
  func.func @transform_1(%arg0: i32) -> (i32, i32) {
    %c0_i32 = arith.constant 0 : i32
    %c0_i32_0 = arith.constant 0 : i32
    %c0_i32_1 = arith.constant 0 : i32
    return %c0_i32, %c0_i32_0 : i32, i32
  }
  func.func @transform_2(%arg0: i32) -> (i32, i32) {
    %c0_i32 = arith.constant 0 : i32
    %c0_i32_0 = arith.constant 0 : i32
    %c0_i32_1 = arith.constant 0 : i32
    return %c0_i32, %c0_i32_0 : i32, i32
  }
  func.func @transform_3(%arg0: i32) -> (i32, i32) {
    %c0_i32 = arith.constant 0 : i32
    %c0_i32_0 = arith.constant 0 : i32
    %c0_i32_1 = arith.constant 0 : i32
    return %c0_i32, %c0_i32_0 : i32, i32
  }
  func.func @transform_4(%arg0: i32) -> (i32, i32) {
    %c0_i32 = arith.constant 0 : i32
    %c0_i32_0 = arith.constant 0 : i32
    return %arg0, %c0_i32 : i32, i32
  }
}

</mosaic_0001>

<bundles_post_ra>
// kernel: tpu_custom_call.1
= control target key start
LH: loop header
LB: loop body
LE: loop exit
PB: predicated region body
PF: predicated region fallthrough
CT: control target
= control target key end

     0   :  { %9 = vsyncpa [#allocation3], 0  ;;  %s1110_s0 = inlined_call_operand.hbm [shape: f32[16,32], index: 0, kind: input, shape index: {}]   ;;  %s1111_s1 = inlined_call_operand.hbm [shape: f32[32,32], index: 1, kind: input, shape index: {}]   ;;  %s1112_s2 = inlined_call_operand.hbm [shape: f32[32,32], index: 2, kind: input, shape index: {}]   ;;  %s1113_s3 = inlined_call_operand.vmem [shape: f32[4,32], index: 3, kind: input, shape index: {}]   ;;  %s1114_s4 = inlined_call_operand.hbm [shape: f32[16,32], index: 4, kind: output, shape index: {}]  }
   0x1   :  { %11 = vsyncpa [#allocation3 + $0x1], 0 }
   0x2   :  { %12 = vsyncpa [#allocation6], 0 }
   0x3   :  { %13 = vsyncpa [#allocation4], 0 }
   0x4   :  { %15 = vsyncpa [#allocation4 + $0x1], 0  ;;  %s869_s15 = smov 0   ;;  %s871_s16 = smov 0  }
   0x5   :  { %s873_s17 = smov 0   ;;  %s875_s18 = smov 0  }
   0x6 LB: > { %s890_s19 = sadd.s32 4294967295, %s833_s18   ;;  %s541_s20 = sadd.s32 4294967294, %s833_s18   ;;  %s833_s18 = sphi %s875_s18, %s1134_s18   ;;  %s829_s17 = sphi %s873_s17, %s1133_s17   ;;  %s825_s16 = sphi %s871_s16, %s1132_s16   ;;  %s821_s15 = sphi %s869_s15, %s1131_s15  }
   0x7   : > { %p41_p0 = scmp.ne.s32.totalorder %s825_s16, %s821_s15  ;;  %p1115_p1 = scmp.eq.s32.totalorder %s890_s19, 0 }
   0x8   : > { %p134_p3 = scmp.eq.s32.totalorder %s541_s20, 1  ;;  %p542_p5 = scmp.ge.s32.totalorder %s833_s18, 1 }
   0x9   : > { %p899_p4 = por %p1115_p1, %p41_p0  ;;  %p141_p7 = scmp.lt.s32.totalorder %s833_s18, 3 }
   0xa   : > { %p904_p6 = por %p134_p3, %p41_p0  ;;  %s835_s24 = smov [#allocation5]  }
   0xb   : > { %s1118_s21 = scalar_select %p899_p4, 1, 0 }
   0xc   : > { %s1119_s22 = scalar_select %p904_p6, 1, 0 }
   0xd   : > { %p909_p8 = pnand %p542_p5, %p141_p7  ;;  %s153_s25 = sshll.u32 %s835_s24, 4  ;;  %s913_s25 = int_to_ptr.vmem [resolvable:$true] %s153_s25 }
   0xe   : > { %s836_s27 = smov [#allocation7]   ;;  %s677_s5 = scalar_lea.hbm %s1111_s1, 512 }
   0xf   : > { %p615_p9 = pneg %p909_p8  ;;  %s166_s28 = sshll.u32 %s836_s27, 4  ;;  %s924_s28 = int_to_ptr.vmem [resolvable:$true] %s166_s28 }
  0x10   : > { %p678_p12 = scmp.ne.s32.totalorder %s1111_s1, %s677_s5  ;;  %p684_p5 = scmp.lt.u32.totalorder %s677_s5, %s1111_s1 }
  0x11   : > { %p920_p11 = pnand %p615_p9, %p1115_p1 }
  0x13   : > { %p679_p13 = pneg %p920_p11 }
  0x15   : > { %p680_p0 = pnand %p679_p13, %p678_p12 }
  0x17   : > { %p681_p3 = pneg %p680_p0 }
  0x19   : > { %p686_p7 = pnand %p684_p5, %p681_p3 }
  0x1b   : > { %689 = shalt.err (!%p686_p7)
}
  0x1c   : > { %s690_s10 = scalar_lea.vmem %s913_s25, 512  ;;  %p698_p2 = scmp.lt.s32.totalorder %s913_s25, %s913_s25 }
  0x1d   : > { %p691_p9 = scmp.ne.s32.totalorder %s913_s25, %s690_s10  ;;  %p699_p12 = scmp.lt.s32.totalorder %s690_s10, %s690_s10 }
  0x1f   : > { %p693_p10 = pnand %p691_p9, %p679_p13  ;;  %p700_p0 = por %p699_p12, %p698_p2 }
  0x21   : > { %p694_p1 = pneg %p693_p10 }
  0x23   : > { %p701_p6 = pnand %p700_p0, %p694_p1 }
  0x25   : > { %704 = shalt.err (!%p701_p6)
}
  0x26   : > { %s837_s11 = smov 128   ;;  %s838_s12 = smov 8  }
  0x27   : > { %618 = dma.hbm_to_vmem [thread:$0]  (!%p920_p11), %s1111_s1, 512, %s913_s25, [#allocation6], %s837_s11, %s837_s11, %s838_s12  }
  0x28   : > { %s705_s27 = scalar_lea.hbm %s1112_s2, 512 }
  0x29   : > { %p706_p2 = scmp.ne.s32.totalorder %s1112_s2, %s705_s27  ;;  %p712_p10 = scmp.lt.u32.totalorder %s705_s27, %s1112_s2 }
  0x2b   : > { %p708_p1 = pnand %p706_p2, %p679_p13 }
  0x2d   : > { %p709_p6 = pneg %p708_p1 }
  0x2f   : > { %p714_p3 = pnand %p712_p10, %p709_p6 }
  0x31   : > { %717 = shalt.err (!%p714_p3)
}
  0x32   : > { %s718_s25 = scalar_lea.vmem %s924_s28, 512  ;;  %p726_p12 = scmp.lt.s32.totalorder %s924_s28, %s924_s28 }
  0x33   : > { %p719_p5 = scmp.ne.s32.totalorder %s924_s28, %s718_s25  ;;  %p727_p0 = scmp.lt.s32.totalorder %s718_s25, %s718_s25 }
  0x35   : > { %p721_p7 = pnand %p719_p5, %p679_p13  ;;  %p728_p2 = por %p727_p0, %p726_p12 }
  0x37   : > { %p722_p9 = pneg %p721_p7 }
  0x39   : > { %p729_p1 = pnand %p728_p2, %p722_p9 }
  0x3b   : > { %732 = shalt.err (!%p729_p1)
}
  0x3c   : > { %621 = dma.hbm_to_vmem [thread:$0]  (!%p920_p11), %s1112_s2, 512, %s924_s28, [#allocation6], %s837_s11, %s837_s11, %s838_s12  }
  0x3d   : > { %s979_s9 = sadd.s32 1, %s833_s18   ;;  %s28_s26 = sadd.s32 1, %s829_s17 }
  0x3e   : > { %s25_s10 = ssub.s32 %s833_s18, %s979_s9  ;;  %p35_p13 = scmp.ne.s32.totalorder %s829_s17, %s825_s16 }
  0x3f   : > { %p26_p6 = scmp.eq.s32.totalorder %s25_s10, 0  ;;  %p36_p10 = scmp.eq.s32.totalorder %s833_s18, 0 }
  0x40   : > { %p1122_p3 = scmp.eq.s32.totalorder %s890_s19, 1  ;;  %p632_p7 = scmp.lt.s32.totalorder %s833_s18, 2 }
  0x41   : > { %s995_s14 = scalar_select %p26_p6, %s829_s17, %s28_s26  }
  0x42   : > { %p989_p5 = por %p1122_p3, %p35_p13  ;;  %p37_p9 = por %p36_p10, %p35_p13 }
  0x43   : > { %s183_s20 = sand.u32 1, %s829_s17   ;;  %s547_s28 = sshll.u32 %s833_s18, 7 }
  0x44   : > { %s1123_s13 = scalar_select %p989_p5, 1, 0 }
  0x45   : > { %s546_s24 = sshll.u32 %s183_s20, 3  ;;  %s1002_s27 = scalar_lea.hbm %s1110_s0, %s547_s28 }
  0x46   : > { %s187_s29 = scalar_lea.vmem [#allocation2], %s546_s24  ;;  %p1006_p11 = pnand %p632_p7, %p37_p9 }
  0x47   : > { %s194_s30 = sshll.u32 %s187_s29, 4  ;;  %s184_s6 = scalar_lea.sflag [#allocation3], %s183_s20  ;;  %s1004_s30 = int_to_ptr.vmem [resolvable:$true] %s194_s30 }
  0x48   : > { %s733_s25 = scalar_lea.hbm %s1002_s27, 128  ;;  %p735_p0 = pneg %p1006_p11 }
  0x49   : > { %p734_p12 = scmp.ne.s32.totalorder %s1002_s27, %s733_s25  ;;  %s738_s26 = scalar_lea.hbm %s1110_s0, 256 }
  0x4a   : > { %p739_p13 = scmp.lt.u32.totalorder %s1002_s27, %s1110_s0  ;;  %p740_p6 = scmp.lt.u32.totalorder %s738_s26, %s733_s25 }
  0x4b   : > { %p736_p2 = pnand %p735_p0, %p734_p12  ;;  %p742_p3 = scmp.lt.u32.totalorder %s733_s25, %s1002_s27 }
  0x4c   : > { %p741_p10 = por %p740_p6, %p739_p13 }
  0x4d   : > { %p737_p1 = pneg %p736_p2 }
  0x4e   : > { %p743_p7 = por %p742_p3, %p741_p10 }
  0x50   : > { %p744_p9 = pnand %p743_p7, %p737_p1 }
  0x52   : > { %747 = shalt.err (!%p744_p9)
}
  0x53   : > { %s748_s20 = scalar_lea.vmem %s1004_s30, 128  ;;  %s839_s28 = smov [#allocation2]  }
  0x54   : > { %p749_p12 = scmp.ne.s32.totalorder %s1004_s30, %s748_s20  ;;  %s753_s11 = sshll.u32 %s839_s28, 4  ;;  %s754_s11 = int_to_ptr.vmem [resolvable:$false] %s753_s11 }
  0x55   : > { %s755_s12 = scalar_lea.vmem %s754_s11, 256  ;;  %p756_p4 = scmp.lt.s32.totalorder %s1004_s30, %s754_s11 }
  0x56   : > { %p751_p2 = pnand %p749_p12, %p735_p0  ;;  %p757_p13 = scmp.lt.s32.totalorder %s755_s12, %s748_s20 }
  0x58   : > { %p752_p5 = pneg %p751_p2  ;;  %p758_p6 = por %p757_p13, %p756_p4 }
  0x5a   : > { %p759_p10 = pnand %p758_p6, %p752_p5 }
  0x5c   : > { %762 = shalt.err (!%p759_p10)
}
  0x5d   : > { %625 = dma.hbm_to_vmem [thread:$0]  (!%p1006_p11), %s1002_s27, 128, %s1004_s30, %s184_s6  }
  0x5e   : > { %203 = sbr.rel (%p909_p8) target bundleno = 735 (0x2df), region = 36  ;;  %s1038_s29 = sand.u32 (!%p909_p8), 1, %s825_s16  }
  0x5f   : > { %s549_s25 = sshll.u32 (!%p909_p8), %s1038_s29, 3  ;;  %s206_s7 = scalar_lea.sflag (!%p909_p8), [#allocation3], %s1038_s29 }
  0x60   : > { %s209_s8 = scalar_lea.vmem (!%p909_p8), [#allocation2], %s549_s25  ;;  %p1125_p4 = scmp.ne.s32.totalorder (!%p909_p8), %s1118_s21, 0 }
  0x65   : > { %808 = dma.done.wait (%p1125_p4), %s206_s7, 128  }
  0x66   : > { %810 = vsyncadd (%p1125_p4), %s206_s7, 4294967168  ;;  %p1126_p5 = scmp.eq.s32.totalorder %s890_s19, 0 }
  0x68   : > { %812 = dma.done.wait (%p1126_p5), [#allocation6], 1024   ;;  %p1127_p8 = pmov %p1126_p5 }
  0x69   : > { %v840_v0 = vmov 0.0|0.0   ;;  %vm841_vm0 = vmmov 0   ;;  %v842_v1 = vmov 0.0   ;;  %v242_v2 = vld [vmem:[#allocation5] sm:$0xff]  ;;  %v243_v3 = vld [vmem:[#allocation5 + $0x8] sm:$0xff]  ;;  %v244_v4 = vld [vmem:[#allocation5 + $0x10] sm:$0xff]  ;;  %v252_v15 = vlaneseq }
  0x6a   : > { %814 = vsyncadd (%p1127_p8), [#allocation6], 4294966272  ;;  %591 = vmatprep.subr.bf16.mxu0 %v840_v0  ;;  %577 = vmatprep.mubr.msk.f32.mxu0 %vm841_vm0, %v842_v1  ;;  %v592_v5 = vpack.c.bf16 %v243_v3, %v242_v2  ;;  %v245_v6 = vld [vmem:[#allocation5 + $0x18] sm:$0xff]  ;;  %v246_v7 = vld [vmem:[#allocation7] sm:$0xff]  ;;  %vm256_vm1 = vcmask 261120   ;;  %s556_s27 = sshll.u32 %s890_s19, 7 }
  0x6b   : > { %597 = vmatprep.subr.bf16.mxu1 %v840_v0  ;;  %588 = vmatprep.mubr.msk.f32.mxu1 %vm841_vm0, %v842_v1  ;;  %v247_v8 = vld [vmem:[#allocation7 + $0x8] sm:$0xff]  ;;  %v595_v9 = vpack.c.bf16 %v245_v6, %v244_v4  ;;  %v251_v11 = vld [vmem:[%s209_s8] sm:$0xff]  ;;  %v253_v16 = vshrl.u32 %v252_v15, 7  ;;  %s241_s30 = scalar_lea.vmem [#allocation8], %s549_s25  ;;  %s1065_s10 = scalar_lea.hbm %s1114_s4, %s556_s27 }
  0x6c   : > { %593 = vmatpush3.bf16.msra.mxu0 %v592_v5  ;;  %v598_v10 = vpack.c.bf16 %v247_v8, %v246_v7  ;;  %v248_v12 = vld [vmem:[#allocation7 + $0x10] sm:$0xff]  ;;  %v249_v13 = vld [vmem:[#allocation7 + $0x18] sm:$0xff]  ;;  %s452_s5 = sshll.u32 %s241_s30, 4  ;;  %s439_s24 = scalar_lea.sflag [#allocation4], %s1038_s29  ;;  %s1067_s5 = int_to_ptr.vmem [resolvable:$true] %s452_s5 }
  0x6d   : > { %594 = vmatprep.subr.bf16.mxu0 %v840_v0  ;;  %v601_v14 = vpack.c.bf16 %v249_v13, %v248_v12  ;;  %v254_v17 = vsub.s32 0, %v253_v16  ;;  %v250_v18 = vld [vmem:[%s1113_s3] sm:$0xf]  ;;  %v333_v24 = vsub.s32 1, %v253_v16  ;;  %v429_v42 = vsub.s32 2, %v253_v16  ;;  %s763_s20 = scalar_lea.vmem %s1067_s5, 128 }
  0x6e   : > { %599 = vmatpush3.bf16.msra.mxu1 %v598_v10  ;;  %v434_v43 = vsub.s32 3, %v253_v16  ;;  %p764_p11 = scmp.ne.s32.totalorder %s1067_s5, %s763_s20  ;;  %p1128_p0 = scmp.ne.s32.totalorder %s1123_s13, 0 }
  0x6f   : > { %600 = vmatprep.subr.bf16.mxu1 %v840_v0  ;;  %v255_v19 = vrot.slane %v250_v18, %v254_v17  ;;  %v334_v25 = vrot.slane %v250_v18, %v333_v24  ;;  %v430_v44 = vrot.slane %v250_v18, %v429_v42  ;;  %s843_s19 = smov [#allocation8]  }
  0x70   : > { %596 = vmatpush3.bf16.msra.mxu0 %v595_v9  ;;  %v435_v47 = vrot.slane %v250_v18, %v434_v43  ;;  %p765_p1 = pnand %p764_p11, %p1128_p0  ;;  %s767_s28 = sshll.u32 %s843_s19, 4  ;;  %s768_s28 = int_to_ptr.vmem [resolvable:$false] %s767_s28 }
  0x71   : > { %s769_s11 = scalar_lea.vmem %s768_s28, 256  ;;  %p770_p7 = scmp.lt.s32.totalorder %s1067_s5, %s768_s28 }
  0x72   : > { %602 = vmatpush3.bf16.msra.mxu1 %v601_v14  ;;  %p766_p3 = pneg %p765_p1  ;;  %p771_p9 = scmp.lt.s32.totalorder %s769_s11, %s763_s20 }
  0x73   : > { %578 = vmatmul.mubr.msk.f32.vlgmr.msra.gmra.mrb[0].mxu0 %vm256_vm1, %v251_v11 }
  0x74   : > { %p772_p12 = por %p771_p9, %p770_p7 }
  0x76   : > { %p773_p2 = pnand %p772_p12, %p766_p3 }
 0x146   : > { %v326_v20 = vpop.f32.mrb[0].mxu0 }
 0x147   : > { %v327_v21 = vadd.f32 %v326_v20, %v255_v19  ;;  %v579_v22 = vpop.f32.mrb[1].mxu0 }
 0x149   : > { %v330_v23 = vmax.f32 %v327_v21, 0.0 }
 0x14b   : > { %589 = vmatmul.mubr.msk.f32.vlgmr.msra.gmra.mrb[0].mxu1 %vm256_vm1, %v330_v23 }
 0x21e   : > { %v404_v26 = vpop.f32.mrb[0].mxu1 }
 0x21f   : > { %v405_v27 = vadd.f32 %v404_v26, %v334_v25  ;;  %v590_v28 = vpop.f32.mrb[1].mxu1 }
 0x221   : > { %v408_v29 = vmax.f32 %v405_v27, 0.0 }
 0x223   : > { %v409_v30 = vadd.f32 %v408_v29, %v330_v23 }
 0x225   : > { %v410_v31 = vsel %vm256_vm1, %v409_v30, 0.0  ;;  %v415_v32 = vmul.f32 %v409_v30, %v409_v30 }
 0x226   : > { %411 = vadd.xlane.f32.xlu0 %v410_v31 }
 0x227   : > { %v416_v33 = vsel %vm256_vm1, %v415_v32, 0.0 }
 0x22a   : > { %417 = vadd.xlane.f32.xlu0 %v416_v33 }
 0x2b3   : > { %v412_v34 = vpop.xlane.xlu0 %411 }
 0x2b4   : > { %v414_v35 = vmul.f32 0.03125, %v412_v34 }
 0x2b6   : > { %v420_v37 = vmul.f32 %v414_v35, %v414_v35  ;;  %v423_v45 = vsub.f32 %v409_v30, %v414_v35 }
 0x2b7   : > { %v418_v36 = vpop.xlane.xlu0 %417 }
 0x2b8   : > { %v419_v38 = vmul.f32 0.03125, %v418_v36 }
 0x2ba   : > { %v421_v39 = vsub.f32 %v419_v38, %v420_v37 }
 0x2bc   : > { %v422_v40 = vmax.f32 %v421_v39, 0.0 }
 0x2be   : > { %v424_v41 = vadd.f32 1e-05, %v422_v40 }
 0x2c0   : > { %675 = vrsqrt.f32 %v424_v41 }
 0x2ca   : > { %v676_v46 = vpop.eup %675 }
 0x2cb   : > { %v426_v48 = vmul.f32 %v676_v46, %v423_v45 }
 0x2cd   : > { %v431_v49 = vmul.f32 %v430_v44, %v426_v48 }
 0x2cf   : > { %v436_v50 = vadd.f32 %v435_v47, %v431_v49 }
 0x2d1   : > { %437 = vst.msk [vmem:[%s241_s30] sm:$0xff] %vm256_vm1, %v436_v50 }
 0x2d2   : > { %776 = shalt.err (!%p773_p2)
}
 0x2d3   : > { %s777_s12 = scalar_lea.hbm %s1065_s10, 128  ;;  %s781_s7 = scalar_lea.hbm %s1114_s4, 256 }
 0x2d4   : > { %p778_p13 = scmp.ne.s32.totalorder %s1065_s10, %s777_s12  ;;  %p782_p4 = scmp.lt.u32.totalorder %s1065_s10, %s1114_s4 }
 0x2d5   : > { %p783_p5 = scmp.lt.u32.totalorder %s781_s7, %s777_s12  ;;  %p785_p11 = scmp.lt.u32.totalorder %s777_s12, %s1065_s10 }
 0x2d6   : > { %p779_p6 = pnand %p778_p13, %p1128_p0 }
 0x2d7   : > { %p784_p8 = por %p783_p5, %p782_p4 }
 0x2d8   : > { %p780_p10 = pneg %p779_p6 }
 0x2d9   : > { %p786_p1 = por %p785_p11, %p784_p8 }
 0x2db   : > { %p787_p3 = pnand %p786_p1, %p780_p10 }
 0x2dd   : > { %790 = shalt.err (!%p787_p3)
}
 0x2de   : > { %613 = dma.vmem_to_hbm [thread:$0]  (%p1128_p0), %s1067_s5, 128, %s1065_s10, %s439_s24  }
 0x2df PF: > { %s464_s23 = sand.u32 1, %s821_s15   ;;  %p1129_p7 = scmp.ne.s32.totalorder %s1119_s22, 0 }
 0x2e0   : > { %p1130_p9 = scmp.ge.s32.totalorder %s833_s18, 2  ;;  %s465_s27 = scalar_lea.sflag [#allocation4], %s464_s23 }
 0x2e2   : > { %p627_p12 = pnand %p1130_p9, %p1129_p7 }
 0x2e4   : > { %816 = dma.done.wait (!%p627_p12), %s465_s27, 128  }
 0x2e5   : > { %818 = vsyncadd (!%p627_p12), %s465_s27, 4294967168  ;;  %p18_p2 = scmp.ge.s32.totalorder %s979_s9, 4   ;;  %s1131_s15 = smov %s825_s16 }
 0x2e6   : > { %s1132_s16 = smov %s829_s17  ;;  %s1133_s17 = smov %s995_s14 }
 0x2e7   : > { %s1134_s18 = smov %s979_s9  ;;  %20 = sbr.rel (!%p18_p2) target bundleno = 6 (0x6), region = 89 }
 0x2ee   :  { %470 = vsyncpa [#allocation3], 1 }
 0x2ef   :  { %472 = vsyncpa [#allocation3 + $0x1], 1 }
 0x2f0   :  { %473 = vsyncpa [#allocation6], 1 }
 0x2f1   :  { %474 = vsyncpa [#allocation4], 1 }
 0x2f2   :  { %476 = vsyncpa [#allocation4 + $0x1], 1 }

// kernel: tpu_custom_call.1
= control target key start
LH: loop header
LB: loop body
LE: loop exit
PB: predicated region body
PF: predicated region fallthrough
CT: control target
= control target key end

     0   :  { %9 = vsyncpa [#allocation3], 0  ;;  %s1110_s0 = inlined_call_operand.hbm [shape: f32[16,32], index: 0, kind: input, shape index: {}]   ;;  %s1111_s1 = inlined_call_operand.hbm [shape: f32[32,32], index: 1, kind: input, shape index: {}]   ;;  %s1112_s2 = inlined_call_operand.hbm [shape: f32[32,32], index: 2, kind: input, shape index: {}]   ;;  %s1113_s3 = inlined_call_operand.vmem [shape: f32[4,32], index: 3, kind: input, shape index: {}]   ;;  %s1114_s4 = inlined_call_operand.hbm [shape: f32[16,32], index: 4, kind: output, shape index: {}]  }
   0x1   :  { %11 = vsyncpa [#allocation3 + $0x1], 0 }
   0x2   :  { %12 = vsyncpa [#allocation6], 0 }
   0x3   :  { %13 = vsyncpa [#allocation4], 0 }
   0x4   :  { %15 = vsyncpa [#allocation4 + $0x1], 0  ;;  %s869_s15 = smov 0   ;;  %s871_s16 = smov 0  }
   0x5   :  { %s873_s17 = smov 0   ;;  %s875_s18 = smov 0  }
   0x6 LB: > { %s890_s19 = sadd.s32 4294967295, %s833_s18   ;;  %s541_s20 = sadd.s32 4294967294, %s833_s18   ;;  %s833_s18 = sphi %s875_s18, %s1134_s18   ;;  %s829_s17 = sphi %s873_s17, %s1133_s17   ;;  %s825_s16 = sphi %s871_s16, %s1132_s16   ;;  %s821_s15 = sphi %s869_s15, %s1131_s15  }
   0x7   : > { %p41_p0 = scmp.ne.s32.totalorder %s825_s16, %s821_s15  ;;  %p1115_p1 = scmp.eq.s32.totalorder %s890_s19, 0 }
   0x8   : > { %p134_p3 = scmp.eq.s32.totalorder %s541_s20, 1  ;;  %p542_p5 = scmp.ge.s32.totalorder %s833_s18, 1 }
   0x9   : > { %p899_p4 = por %p1115_p1, %p41_p0  ;;  %p141_p7 = scmp.lt.s32.totalorder %s833_s18, 3 }
   0xa   : > { %p904_p6 = por %p134_p3, %p41_p0  ;;  %s835_s24 = smov [#allocation5]  }
   0xb   : > { %s1118_s21 = scalar_select %p899_p4, 1, 0 }
   0xc   : > { %s1119_s22 = scalar_select %p904_p6, 1, 0 }
   0xd   : > { %p909_p8 = pnand %p542_p5, %p141_p7  ;;  %s153_s25 = sshll.u32 %s835_s24, 4  ;;  %s913_s25 = int_to_ptr.vmem [resolvable:$true] %s153_s25 }
   0xe   : > { %s836_s27 = smov [#allocation7]   ;;  %s677_s5 = scalar_lea.hbm %s1111_s1, 512 }
   0xf   : > { %p615_p9 = pneg %p909_p8  ;;  %s166_s28 = sshll.u32 %s836_s27, 4  ;;  %s924_s28 = int_to_ptr.vmem [resolvable:$true] %s166_s28 }
  0x10   : > { %p678_p12 = scmp.ne.s32.totalorder %s1111_s1, %s677_s5  ;;  %p684_p5 = scmp.lt.u32.totalorder %s677_s5, %s1111_s1 }
  0x11   : > { %p920_p11 = pnand %p615_p9, %p1115_p1 }
  0x13   : > { %p679_p13 = pneg %p920_p11 }
  0x15   : > { %p680_p0 = pnand %p679_p13, %p678_p12 }
  0x17   : > { %p681_p3 = pneg %p680_p0 }
  0x19   : > { %p686_p7 = pnand %p684_p5, %p681_p3 }
  0x1b   : > { %689 = shalt.err (!%p686_p7)
}
  0x1c   : > { %s690_s10 = scalar_lea.vmem %s913_s25, 512  ;;  %p698_p2 = scmp.lt.s32.totalorder %s913_s25, %s913_s25 }
  0x1d   : > { %p691_p9 = scmp.ne.s32.totalorder %s913_s25, %s690_s10  ;;  %p699_p12 = scmp.lt.s32.totalorder %s690_s10, %s690_s10 }
  0x1f   : > { %p693_p10 = pnand %p691_p9, %p679_p13  ;;  %p700_p0 = por %p699_p12, %p698_p2 }
  0x21   : > { %p694_p1 = pneg %p693_p10 }
  0x23   : > { %p701_p6 = pnand %p700_p0, %p694_p1 }
  0x25   : > { %704 = shalt.err (!%p701_p6)
}
  0x26   : > { %s837_s11 = smov 128   ;;  %s838_s12 = smov 8  }
  0x27   : > { %618 = dma.hbm_to_vmem [thread:$0]  (!%p920_p11), %s1111_s1, 512, %s913_s25, [#allocation6], %s837_s11, %s837_s11, %s838_s12  }
  0x28   : > { %s705_s27 = scalar_lea.hbm %s1112_s2, 512 }
  0x29   : > { %p706_p2 = scmp.ne.s32.totalorder %s1112_s2, %s705_s27  ;;  %p712_p10 = scmp.lt.u32.totalorder %s705_s27, %s1112_s2 }
  0x2b   : > { %p708_p1 = pnand %p706_p2, %p679_p13 }
  0x2d   : > { %p709_p6 = pneg %p708_p1 }
  0x2f   : > { %p714_p3 = pnand %p712_p10, %p709_p6 }
  0x31   : > { %717 = shalt.err (!%p714_p3)
}
  0x32   : > { %s718_s25 = scalar_lea.vmem %s924_s28, 512  ;;  %p726_p12 = scmp.lt.s32.totalorder %s924_s28, %s924_s28 }
  0x33   : > { %p719_p5 = scmp.ne.s32.totalorder %s924_s28, %s718_s25  ;;  %p727_p0 = scmp.lt.s32.totalorder %s718_s25, %s718_s25 }
  0x35   : > { %p721_p7 = pnand %p719_p5, %p679_p13  ;;  %p728_p2 = por %p727_p0, %p726_p12 }
  0x37   : > { %p722_p9 = pneg %p721_p7 }
  0x39   : > { %p729_p1 = pnand %p728_p2, %p722_p9 }
  0x3b   : > { %732 = shalt.err (!%p729_p1)
}
  0x3c   : > { %621 = dma.hbm_to_vmem [thread:$0]  (!%p920_p11), %s1112_s2, 512, %s924_s28, [#allocation6], %s837_s11, %s837_s11, %s838_s12  }
  0x3d   : > { %s979_s9 = sadd.s32 1, %s833_s18   ;;  %s28_s26 = sadd.s32 1, %s829_s17 }
  0x3e   : > { %s25_s10 = ssub.s32 %s833_s18, %s979_s9  ;;  %p35_p13 = scmp.ne.s32.totalorder %s829_s17, %s825_s16 }
  0x3f   : > { %p26_p6 = scmp.eq.s32.totalorder %s25_s10, 0  ;;  %p36_p10 = scmp.eq.s32.totalorder %s833_s18, 0 }
  0x40   : > { %p1122_p3 = scmp.eq.s32.totalorder %s890_s19, 1  ;;  %p632_p7 = scmp.lt.s32.totalorder %s833_s18, 2 }
  0x41   : > { %s995_s14 = scalar_select %p26_p6, %s829_s17, %s28_s26  }
  0x42   : > { %p989_p5 = por %p1122_p3, %p35_p13  ;;  %p37_p9 = por %p36_p10, %p35_p13 }
  0x43   : > { %s183_s20 = sand.u32 1, %s829_s17   ;;  %s547_s28 = sshll.u32 %s833_s18, 7 }
  0x44   : > { %s1123_s13 = scalar_select %p989_p5, 1, 0 }
  0x45   : > { %s546_s24 = sshll.u32 %s183_s20, 3  ;;  %s1002_s27 = scalar_lea.hbm %s1110_s0, %s547_s28 }
  0x46   : > { %s187_s29 = scalar_lea.vmem [#allocation2], %s546_s24  ;;  %p1006_p11 = pnand %p632_p7, %p37_p9 }
  0x47   : > { %s194_s30 = sshll.u32 %s187_s29, 4  ;;  %s184_s6 = scalar_lea.sflag [#allocation3], %s183_s20  ;;  %s1004_s30 = int_to_ptr.vmem [resolvable:$true] %s194_s30 }
  0x48   : > { %s733_s25 = scalar_lea.hbm %s1002_s27, 128  ;;  %p735_p0 = pneg %p1006_p11 }
  0x49   : > { %p734_p12 = scmp.ne.s32.totalorder %s1002_s27, %s733_s25  ;;  %s738_s26 = scalar_lea.hbm %s1110_s0, 256 }
  0x4a   : > { %p739_p13 = scmp.lt.u32.totalorder %s1002_s27, %s1110_s0  ;;  %p740_p6 = scmp.lt.u32.totalorder %s738_s26, %s733_s25 }
  0x4b   : > { %p736_p2 = pnand %p735_p0, %p734_p12  ;;  %p742_p3 = scmp.lt.u32.totalorder %s733_s25, %s1002_s27 }
  0x4c   : > { %p741_p10 = por %p740_p6, %p739_p13 }
  0x4d   : > { %p737_p1 = pneg %p736_p2 }
  0x4e   : > { %p743_p7 = por %p742_p3, %p741_p10 }
  0x50   : > { %p744_p9 = pnand %p743_p7, %p737_p1 }
  0x52   : > { %747 = shalt.err (!%p744_p9)
}
  0x53   : > { %s748_s20 = scalar_lea.vmem %s1004_s30, 128  ;;  %s839_s28 = smov [#allocation2]  }
  0x54   : > { %p749_p12 = scmp.ne.s32.totalorder %s1004_s30, %s748_s20  ;;  %s753_s11 = sshll.u32 %s839_s28, 4  ;;  %s754_s11 = int_to_ptr.vmem [resolvable:$false] %s753_s11 }
  0x55   : > { %s755_s12 = scalar_lea.vmem %s754_s11, 256  ;;  %p756_p4 = scmp.lt.s32.totalorder %s1004_s30, %s754_s11 }
  0x56   : > { %p751_p2 = pnand %p749_p12, %p735_p0  ;;  %p757_p13 = scmp.lt.s32.totalorder %s755_s12, %s748_s20 }
  0x58   : > { %p752_p5 = pneg %p751_p2  ;;  %p758_p6 = por %p757_p13, %p756_p4 }
  0x5a   : > { %p759_p10 = pnand %p758_p6, %p752_p5 }
  0x5c   : > { %762 = shalt.err (!%p759_p10)
}
  0x5d   : > { %625 = dma.hbm_to_vmem [thread:$0]  (!%p1006_p11), %s1002_s27, 128, %s1004_s30, %s184_s6  }
  0x5e   : > { %203 = sbr.rel (%p909_p8) target bundleno = 735 (0x2df), region = 36  ;;  %s1038_s29 = sand.u32 (!%p909_p8), 1, %s825_s16  }
  0x5f   : > { %s549_s25 = sshll.u32 (!%p909_p8), %s1038_s29, 3  ;;  %s206_s7 = scalar_lea.sflag (!%p909_p8), [#allocation3], %s1038_s29 }
  0x60   : > { %s209_s8 = scalar_lea.vmem (!%p909_p8), [#allocation2], %s549_s25  ;;  %p1125_p4 = scmp.ne.s32.totalorder (!%p909_p8), %s1118_s21, 0 }
  0x65   : > { %808 = dma.done.wait (%p1125_p4), %s206_s7, 128  }
  0x66   : > { %810 = vsyncadd (%p1125_p4), %s206_s7, 4294967168  ;;  %p1126_p5 = scmp.eq.s32.totalorder %s890_s19, 0 }
  0x68   : > { %812 = dma.done.wait (%p1126_p5), [#allocation6], 1024   ;;  %p1127_p8 = pmov %p1126_p5 }
  0x69   : > { %v840_v0 = vmov 0.0|0.0   ;;  %vm841_vm0 = vmmov 0   ;;  %v842_v1 = vmov 0.0   ;;  %v242_v2 = vld [vmem:[#allocation5] sm:$0xff]  ;;  %v243_v3 = vld [vmem:[#allocation5 + $0x8] sm:$0xff]  ;;  %v244_v4 = vld [vmem:[#allocation5 + $0x10] sm:$0xff]  ;;  %v252_v15 = vlaneseq }
  0x6a   : > { %814 = vsyncadd (%p1127_p8), [#allocation6], 4294966272  ;;  %591 = vmatprep.subr.bf16.mxu0 %v840_v0  ;;  %577 = vmatprep.mubr.msk.f32.mxu0 %vm841_vm0, %v842_v1  ;;  %v592_v5 = vpack.c.bf16 %v243_v3, %v242_v2  ;;  %v245_v6 = vld [vmem:[#allocation5 + $0x18] sm:$0xff]  ;;  %v246_v7 = vld [vmem:[#allocation7] sm:$0xff]  ;;  %vm256_vm1 = vcmask 261120   ;;  %s556_s27 = sshll.u32 %s890_s19, 7 }
  0x6b   : > { %597 = vmatprep.subr.bf16.mxu1 %v840_v0  ;;  %588 = vmatprep.mubr.msk.f32.mxu1 %vm841_vm0, %v842_v1  ;;  %v247_v8 = vld [vmem:[#allocation7 + $0x8] sm:$0xff]  ;;  %v595_v9 = vpack.c.bf16 %v245_v6, %v244_v4  ;;  %v251_v11 = vld [vmem:[%s209_s8] sm:$0xff]  ;;  %v253_v16 = vshrl.u32 %v252_v15, 7  ;;  %s241_s30 = scalar_lea.vmem [#allocation8], %s549_s25  ;;  %s1065_s10 = scalar_lea.hbm %s1114_s4, %s556_s27 }
  0x6c   : > { %593 = vmatpush3.bf16.msra.mxu0 %v592_v5  ;;  %v598_v10 = vpack.c.bf16 %v247_v8, %v246_v7  ;;  %v248_v12 = vld [vmem:[#allocation7 + $0x10] sm:$0xff]  ;;  %v249_v13 = vld [vmem:[#allocation7 + $0x18] sm:$0xff]  ;;  %s452_s5 = sshll.u32 %s241_s30, 4  ;;  %s439_s24 = scalar_lea.sflag [#allocation4], %s1038_s29  ;;  %s1067_s5 = int_to_ptr.vmem [resolvable:$true] %s452_s5 }
  0x6d   : > { %594 = vmatprep.subr.bf16.mxu0 %v840_v0  ;;  %v601_v14 = vpack.c.bf16 %v249_v13, %v248_v12  ;;  %v254_v17 = vsub.s32 0, %v253_v16  ;;  %v250_v18 = vld [vmem:[%s1113_s3] sm:$0xf]  ;;  %v333_v24 = vsub.s32 1, %v253_v16  ;;  %v429_v42 = vsub.s32 2, %v253_v16  ;;  %s763_s20 = scalar_lea.vmem %s1067_s5, 128 }
  0x6e   : > { %599 = vmatpush3.bf16.msra.mxu1 %v598_v10  ;;  %v434_v43 = vsub.s32 3, %v253_v16  ;;  %p764_p11 = scmp.ne.s32.totalorder %s1067_s5, %s763_s20  ;;  %p1128_p0 = scmp.ne.s32.totalorder %s1123_s13, 0 }
  0x6f   : > { %600 = vmatprep.subr.bf16.mxu1 %v840_v0  ;;  %v255_v19 = vrot.slane %v250_v18, %v254_v17  ;;  %v334_v25 = vrot.slane %v250_v18, %v333_v24  ;;  %v430_v44 = vrot.slane %v250_v18, %v429_v42  ;;  %s843_s19 = smov [#allocation8]  }
  0x70   : > { %596 = vmatpush3.bf16.msra.mxu0 %v595_v9  ;;  %v435_v47 = vrot.slane %v250_v18, %v434_v43  ;;  %p765_p1 = pnand %p764_p11, %p1128_p0  ;;  %s767_s28 = sshll.u32 %s843_s19, 4  ;;  %s768_s28 = int_to_ptr.vmem [resolvable:$false] %s767_s28 }
  0x71   : > { %s769_s11 = scalar_lea.vmem %s768_s28, 256  ;;  %p770_p7 = scmp.lt.s32.totalorder %s1067_s5, %s768_s28 }
  0x72   : > { %602 = vmatpush3.bf16.msra.mxu1 %v601_v14  ;;  %p766_p3 = pneg %p765_p1  ;;  %p771_p9 = scmp.lt.s32.totalorder %s769_s11, %s763_s20 }
  0x73   : > { %578 = vmatmul.mubr.msk.f32.vlgmr.msra.gmra.mrb[0].mxu0 %vm256_vm1, %v251_v11 }
  0x74   : > { %p772_p12 = por %p771_p9, %p770_p7 }
  0x76   : > { %p773_p2 = pnand %p772_p12, %p766_p3 }
 0x146   : > { %v326_v20 = vpop.f32.mrb[0].mxu0 }
 0x147   : > { %v327_v21 = vadd.f32 %v326_v20, %v255_v19  ;;  %v579_v22 = vpop.f32.mrb[1].mxu0 }
 0x149   : > { %v330_v23 = vmax.f32 %v327_v21, 0.0 }
 0x14b   : > { %589 = vmatmul.mubr.msk.f32.vlgmr.msra.gmra.mrb[0].mxu1 %vm256_vm1, %v330_v23 }
 0x21e   : > { %v404_v26 = vpop.f32.mrb[0].mxu1 }
 0x21f   : > { %v405_v27 = vadd.f32 %v404_v26, %v334_v25  ;;  %v590_v28 = vpop.f32.mrb[1].mxu1 }
 0x221   : > { %v408_v29 = vmax.f32 %v405_v27, 0.0 }
 0x223   : > { %v409_v30 = vadd.f32 %v408_v29, %v330_v23 }
 0x225   : > { %v410_v31 = vsel %vm256_vm1, %v409_v30, 0.0  ;;  %v415_v32 = vmul.f32 %v409_v30, %v409_v30 }
 0x226   : > { %411 = vadd.xlane.f32.xlu0 %v410_v31 }
 0x227   : > { %v416_v33 = vsel %vm256_vm1, %v415_v32, 0.0 }
 0x22a   : > { %417 = vadd.xlane.f32.xlu0 %v416_v33 }
 0x2b3   : > { %v412_v34 = vpop.xlane.xlu0 %411 }
 0x2b4   : > { %v414_v35 = vmul.f32 0.03125, %v412_v34 }
 0x2b6   : > { %v420_v37 = vmul.f32 %v414_v35, %v414_v35  ;;  %v423_v45 = vsub.f32 %v409_v30, %v414_v35 }
 0x2b7   : > { %v418_v36 = vpop.xlane.xlu0 %417 }
 0x2b8   : > { %v419_v38 = vmul.f32 0.03125, %v418_v36 }
 0x2ba   : > { %v421_v39 = vsub.f32 %v419_v38, %v420_v37 }
 0x2bc   : > { %v422_v40 = vmax.f32 %v421_v39, 0.0 }
 0x2be   : > { %v424_v41 = vadd.f32 1e-05, %v422_v40 }
 0x2c0   : > { %675 = vrsqrt.f32 %v424_v41 }
 0x2ca   : > { %v676_v46 = vpop.eup %675 }
 0x2cb   : > { %v426_v48 = vmul.f32 %v676_v46, %v423_v45 }
 0x2cd   : > { %v431_v49 = vmul.f32 %v430_v44, %v426_v48 }
 0x2cf   : > { %v436_v50 = vadd.f32 %v435_v47, %v431_v49 }
 0x2d1   : > { %437 = vst.msk [vmem:[%s241_s30] sm:$0xff] %vm256_vm1, %v436_v50 }
 0x2d2   : > { %776 = shalt.err (!%p773_p2)
}
 0x2d3   : > { %s777_s12 = scalar_lea.hbm %s1065_s10, 128  ;;  %s781_s7 = scalar_lea.hbm %s1114_s4, 256 }
 0x2d4   : > { %p778_p13 = scmp.ne.s32.totalorder %s1065_s10, %s777_s12  ;;  %p782_p4 = scmp.lt.u32.totalorder %s1065_s10, %s1114_s4 }
 0x2d5   : > { %p783_p5 = scmp.lt.u32.totalorder %s781_s7, %s777_s12  ;;  %p785_p11 = scmp.lt.u32.totalorder %s777_s12, %s1065_s10 }
 0x2d6   : > { %p779_p6 = pnand %p778_p13, %p1128_p0 }
 0x2d7   : > { %p784_p8 = por %p783_p5, %p782_p4 }
 0x2d8   : > { %p780_p10 = pneg %p779_p6 }
 0x2d9   : > { %p786_p1 = por %p785_p11, %p784_p8 }
 0x2db   : > { %p787_p3 = pnand %p786_p1, %p780_p10 }
 0x2dd   : > { %790 = shalt.err (!%p787_p3)
}
 0x2de   : > { %613 = dma.vmem_to_hbm [thread:$0]  (%p1128_p0), %s1067_s5, 128, %s1065_s10, %s439_s24  }
 0x2df PF: > { %s464_s23 = sand.u32 1, %s821_s15   ;;  %p1129_p7 = scmp.ne.s32.totalorder %s1119_s22, 0 }
 0x2e0   : > { %p1130_p9 = scmp.ge.s32.totalorder %s833_s18, 2  ;;  %s465_s27 = scalar_lea.sflag [#allocation4], %s464_s23 }
 0x2e2   : > { %p627_p12 = pnand %p1130_p9, %p1129_p7 }
 0x2e4   : > { %816 = dma.done.wait (!%p627_p12), %s465_s27, 128  }
 0x2e5   : > { %818 = vsyncadd (!%p627_p12), %s465_s27, 4294967168  ;;  %p18_p2 = scmp.ge.s32.totalorder %s979_s9, 4   ;;  %s1131_s15 = smov %s825_s16 }
 0x2e6   : > { %s1132_s16 = smov %s829_s17  ;;  %s1133_s17 = smov %s995_s14 }
 0x2e7   : > { %s1134_s18 = smov %s979_s9  ;;  %20 = sbr.rel (!%p18_p2) target bundleno = 6 (0x6), region = 89 }
 0x2ee   :  { %470 = vsyncpa [#allocation3], 1 }
 0x2ef   :  { %472 = vsyncpa [#allocation3 + $0x1], 1 }
 0x2f0   :  { %473 = vsyncpa [#allocation6], 1 }
 0x2f1   :  { %474 = vsyncpa [#allocation4], 1 }
 0x2f2   :  { %476 = vsyncpa [#allocation4 + $0x1], 1 }

</bundles_post_ra>
